<compile_context>
chip_gen: v5e
topology: v5e:2x2
jax: 0.10.0
libtpu: 0.0.40
codegen_flags: <defaults>
</compile_context>

<pallas_src>
import math
from functools import partial

import jax
import jax.numpy as jnp
from jax.experimental import pallas as pl
from jax.experimental.pallas import tpu as pltpu


# ----------------------------------------------------------------------------- kernel
def embedding_block_kernel(tc_ref, w_ref, misc_ref, out_ref, *, half, Dt, Dc, ncp):
    D = Dt + Dc

    tc = tc_ref[...]                                  # (tb, 2) int32 = [time | condition]
    t = tc[:, 0:1].astype(jnp.float32)                # (tb, 1)  time.long().float()
    cond = tc[:, 1:2]                                 # (tb, 1)  int32 class ids

    misc = misc_ref[...]                              # (3, D) f32
    freq2 = misc[0:1, 0:2 * half]                     # (1, Dt) = [freq | freq]
    b1 = misc[1:2, :]                                 # (1, D)  = [b1_time | b1_class]
    b2p = misc[2:3, :]                                # (1, D)  = b2 @ Wp_pad + bp_pad

    # --- PositionalEncoding without a lane concat -----------------------------
    # freq is duplicated along lanes; selecting sin on lanes [0,half) and cos on
    # [half,2*half) reproduces cat([sin(t*f), cos(t*f)], dim=1) exactly.
    ang = t * freq2                                   # (tb, Dt)
    lane = jax.lax.broadcasted_iota(jnp.int32, ang.shape, 1)
    pos = jnp.where(lane < half, jnp.sin(ang), jnp.cos(ang))      # (tb, Dt)

    # --- nn.Embedding gather as one-hot (table folded into class-W1 rows) -----
    cls = jax.lax.broadcasted_iota(jnp.int32, (cond.shape[0], ncp), 1)
    onehot = (cond == cls).astype(jnp.float32)        # (tb, ncp)

    # --- fused layer 1 (K-split over [pos | class one-hot], ref-sliced weights)
    h1 = (jnp.dot(pos, w_ref[0:Dt, :], preferred_element_type=jnp.float32)
          + jnp.dot(onehot, w_ref[Dt:Dt + ncp, :], preferred_element_type=jnp.float32)
          + b1)                                       # (tb, D) = [h1_time | h1_class]
    h1 = h1 * jax.nn.sigmoid(h1)                      # SiLU

    # --- fused layer 2 + combine_proj (folded): cols [Dt:D) are exactly zero ---
    res = jnp.dot(h1, w_ref[Dt + ncp:Dt + ncp + D, :],
                  preferred_element_type=jnp.float32) + b2p       # (tb, D)
    out_ref[...] = res                                # lane-dense 128-wide store


# ----------------------------------------------------------------------------- params
def make_params(time_embed_dim=64, class_embed_dim=64, num_classes=6, seed=0):
    """Raw (PyTorch-layout-equivalent) parameters; weights stored (in, out)."""
    assert time_embed_dim % 2 == 0
    # TODO(synk): odd positional-encoding dims (zero-pad branch) not implemented.
    key = jax.random.PRNGKey(seed)
    ks = jax.random.split(key, 8)

    def lin(k, fan_in, fan_out):
        kw, kb = jax.random.split(k)
        bound = 1.0 / math.sqrt(fan_in)
        w = jax.random.uniform(kw, (fan_in, fan_out), jnp.float32, -bound, bound)
        b = jax.random.uniform(kb, (fan_out,), jnp.float32, -bound, bound)
        return w, b

    half = time_embed_dim // 2
    freq = jnp.exp(jnp.arange(half, dtype=jnp.float32)
                   * -(math.log(10000.0) / (half - 1)))

    w1t, b1t = lin(ks[0], time_embed_dim, time_embed_dim)
    w2t, b2t = lin(ks[1], time_embed_dim, time_embed_dim)
    emb_table = jax.random.normal(ks[2], (num_classes, class_embed_dim), jnp.float32)
    w1c, b1c = lin(ks[3], class_embed_dim, class_embed_dim)
    w2c, b2c = lin(ks[4], class_embed_dim, class_embed_dim)
    wp, bp = lin(ks[5], time_embed_dim + class_embed_dim, time_embed_dim)

    return dict(freq=freq, emb_table=emb_table,
                w1t=w1t, b1t=b1t, w2t=w2t, b2t=b2t,
                w1c=w1c, b1c=b1c, w2c=w2c, b2c=b2c,
                wp=wp, bp=bp,
                time_embed_dim=time_embed_dim, class_embed_dim=class_embed_dim,
                num_classes=num_classes)


def pack_params(p):
    """One-time (zero runtime cost) packing + algebraic folds into kernel operands."""
    Dt, Dc = p["time_embed_dim"], p["class_embed_dim"]
    D = Dt + Dc
    half = Dt // 2

    # Block-diagonal layer weights (time block | class block).
    W1 = (jnp.zeros((D, D), jnp.float32)
          .at[:Dt, :Dt].set(p["w1t"]).at[Dt:, Dt:].set(p["w1c"]))
    W2 = (jnp.zeros((D, D), jnp.float32)
          .at[:Dt, :Dt].set(p["w2t"]).at[Dt:, Dt:].set(p["w2c"]))

    # combine_proj zero-padded to 128 output lanes, then folded into layer 2.
    Wp_pad = jnp.zeros((D, D), jnp.float32).at[:, :Dt].set(p["wp"])
    W2p = W2 @ Wp_pad                                                  # (D, D)
    b2_full = jnp.concatenate([p["b2t"], p["b2c"]])
    bp_pad = jnp.zeros((D,), jnp.float32).at[:Dt].set(p["bp"])
    b2p = b2_full @ Wp_pad + bp_pad                                    # (D,)

    # Embedding table (padded to a sublane multiple) folded into class-W1.
    nc = p["emb_table"].shape[0]
    ncp = max(8, ((nc + 7) // 8) * 8)
    table_pad = jnp.zeros((ncp, Dc), jnp.float32).at[:nc].set(p["emb_table"])
    TW1 = table_pad @ W1[Dt:, :]                                       # (ncp, D)

    # Single weight slab: [W1_pos_rows ; table@W1_class ; W2p]  -> (Dt+ncp+D, D)
    wslab = jnp.concatenate([W1[:Dt, :], TW1, W2p], axis=0)

    misc = jnp.zeros((3, D), jnp.float32)
    misc = misc.at[0, :2 * half].set(jnp.concatenate([p["freq"], p["freq"]]))
    misc = misc.at[1, :].set(jnp.concatenate([p["b1t"], p["b1c"]]))
    misc = misc.at[2, :].set(b2p)

    return dict(wslab=wslab, misc=misc, Dt=Dt, Dc=Dc, half=half, ncp=ncp)


# ----------------------------------------------------------------------------- wrapper
def embedding_block_forward(time, condition, packed, *, max_batch_tile=1024):
    """time: (B,) int, condition: (B,) int -> (B, time_embed_dim) f32."""
    Dt, Dc, half, ncp = packed["Dt"], packed["Dc"], packed["half"], packed["ncp"]
    D = Dt + Dc
    B = time.shape[0]

    def r8(x):
        return ((x + 7) // 8) * 8

    # Batch padding / tiling: weights stay resident per tile (index_map -> block 0).
    # For B >= 16 use >= 2 grid steps so both v7x TensorCores get batch work;
    # the large default tile amortizes per-step overhead on v5e/v6e.
    pB = r8(B)
    if pB >= 16:
        tb = min(max_batch_tile, r8((pB + 1) // 2))
    else:
        tb = pB
    pB = ((pB + tb - 1) // tb) * tb

    tc = jnp.stack([time.astype(jnp.int32), condition.astype(jnp.int32)], axis=1)
    if pB != B:
        tc = jnp.pad(tc, ((0, pB - B), (0, 0)))

    kernel = partial(embedding_block_kernel, half=half, Dt=Dt, Dc=Dc, ncp=ncp)

    out = pl.pallas_call(
        kernel,
        out_shape=jax.ShapeDtypeStruct((pB, D), jnp.float32),
        grid_spec=pltpu.PrefetchScalarGridSpec(
            num_scalar_prefetch=0,
            grid=(pB // tb,),
            in_specs=[
                pl.BlockSpec((tb, 2), lambda i: (i, 0)),              # [time | cond] ints
                pl.BlockSpec((Dt + ncp + D, D), lambda i: (0, 0)),    # weight slab (resident)
                pl.BlockSpec((3, D), lambda i: (0, 0)),               # freq + biases (resident)
            ],
            out_specs=pl.BlockSpec((tb, D), lambda i: (i, 0)),        # lane-dense 128-wide
        ),
        compiler_params=pltpu.CompilerParams(dimension_semantics=("parallel",)),
    )(tc, packed["wslab"], packed["misc"])

    return out[:B, :Dt]


# ----------------------------------------------------------------------------- reference
def _reference(time, condition, p):
    """Pure-JAX reference mirroring the PyTorch forward (uses raw, unfolded params)."""
    t = time.astype(jnp.int32).astype(jnp.float32)
    ang = t[:, None] * p["freq"][None, :]
    pos = jnp.concatenate([jnp.sin(ang), jnp.cos(ang)], axis=1)

    def mlp(x, w1, b1, w2, b2):
        h = x @ w1 + b1
        h = h * jax.nn.sigmoid(h)
        return h @ w2 + b2

    te = mlp(pos, p["w1t"], p["b1t"], p["w2t"], p["b2t"])
    ce_in = jnp.take(p["emb_table"], condition.astype(jnp.int32), axis=0)
    ce = mlp(ce_in, p["w1c"], p["b1c"], p["w2c"], p["b2c"])
    comb = jnp.concatenate([te, ce], axis=1)
    return comb @ p["wp"] + p["bp"]


# ----------------------------------------------------------------------------- main
if __name__ == "__main__":
    B = 8
    num_classes = 6
    raw = make_params(time_embed_dim=64, class_embed_dim=64,
                      num_classes=num_classes, seed=0)
    packed = pack_params(raw)

    key = jax.random.PRNGKey(0)
    k1, k2 = jax.random.split(key)
    time = jax.random.randint(k1, (B,), 0, 1000, dtype=jnp.int32)
    condition = jax.random.randint(k2, (B,), 0, num_classes, dtype=jnp.int32)

    out = embedding_block_forward(time, condition, packed)
    out = jax.block_until_ready(out)

    ref = _reference(time, condition, raw)
    assert out.shape == (B, 64)
    assert jnp.allclose(out, ref, atol=1e-4, rtol=1e-4), "mismatch vs reference"

    print("KERNEL_OK")
</pallas_src>

<mosaic_0001>
module attributes {stable_mosaic.version = 11 : i64} {
  func.func @embedding_block_kernel(%arg0: i32, %arg1: memref<8x2xi32, #tpu.memory_space<vmem>>, %arg2: memref<200x128xf32, #tpu.memory_space<vmem>>, %arg3: memref<3x128xf32, #tpu.memory_space<vmem>>, %arg4: memref<8x128xf32, #tpu.memory_space<vmem>>) attributes {dimension_semantics = [#tpu.dimension_semantics<parallel>], iteration_bounds = array<i64: 1>, scalar_prefetch = 0 : i64, scratch_operands = 0 : i64, tpu.core_type = #tpu.core_type<tc>, window_params = [{transform_indices = @transform_0, window_bounds = array<i64: 8, 2>}, {pipeline_mode = #tpu.pipeline_mode<synchronous>, transform_indices = @transform_1, window_bounds = array<i64: 200, 128>}, {pipeline_mode = #tpu.pipeline_mode<synchronous>, transform_indices = @transform_2, window_bounds = array<i64: 3, 128>}, {transform_indices = @transform_3, window_bounds = array<i64: 8, 128>}]} {
    %c0 = arith.constant 0 : index
    %c0_0 = arith.constant 0 : index
    %0 = vector.load %arg1[%c0, %c0_0] : memref<8x2xi32, #tpu.memory_space<vmem>>, vector<8x2xi32>
    %1 = vector.extract_strided_slice %0 {offsets = [0, 0], sizes = [8, 1], strides = [1, 1]} : vector<8x2xi32> to vector<8x1xi32>
    %2 = arith.sitofp %1 : vector<8x1xi32> to vector<8x1xf32>
    %3 = vector.extract_strided_slice %0 {offsets = [0, 1], sizes = [8, 1], strides = [1, 1]} : vector<8x2xi32> to vector<8x1xi32>
    %c0_1 = arith.constant 0 : index
    %c0_2 = arith.constant 0 : index
    %4 = vector.load %arg3[%c0_1, %c0_2] : memref<3x128xf32, #tpu.memory_space<vmem>>, vector<3x128xf32>
    %5 = vector.extract_strided_slice %4 {offsets = [0, 0], sizes = [1, 64], strides = [1, 1]} : vector<3x128xf32> to vector<1x64xf32>
    %6 = vector.extract_strided_slice %4 {offsets = [1, 0], sizes = [1, 128], strides = [1, 1]} : vector<3x128xf32> to vector<1x128xf32>
    %7 = vector.extract_strided_slice %4 {offsets = [2, 0], sizes = [1, 128], strides = [1, 1]} : vector<3x128xf32> to vector<1x128xf32>
    %8 = vector.broadcast %2 : vector<8x1xf32> to vector<8x64xf32>
    %9 = vector.broadcast %5 : vector<1x64xf32> to vector<8x64xf32>
    %10 = arith.mulf %8, %9 : vector<8x64xf32>
    %11 = tpu.iota {dimensions = array<i32: 1>} : vector<8x64xi32>
    %c32_i32 = arith.constant 32 : i32
    %12 = vector.broadcast %c32_i32 : i32 to vector<8x64xi32>
    %13 = arith.cmpi slt, %11, %12 : vector<8x64xi32>
    %14 = math.sin %10 : vector<8x64xf32>
    %15 = math.cos %10 : vector<8x64xf32>
    %16 = arith.select %13, %14, %15 : vector<8x64xi1>, vector<8x64xf32>
    %17 = tpu.iota {dimensions = array<i32: 1>} : vector<8x8xi32>
    %18 = vector.broadcast %3 : vector<8x1xi32> to vector<8x8xi32>
    %19 = arith.cmpi eq, %18, %17 : vector<8x8xi32>
    %20 = arith.extui %19 : vector<8x8xi1> to vector<8x8xi32>
    %21 = arith.sitofp %20 : vector<8x8xi32> to vector<8x8xf32>
    %c0_3 = arith.constant 0 : index
    %c0_4 = arith.constant 0 : index
    %22 = vector.load %arg2[%c0_3, %c0_4] : memref<200x128xf32, #tpu.memory_space<vmem>>, vector<64x128xf32>
    %cst = arith.constant dense<0.000000e+00> : vector<8x128xf32>
    %23 = tpu.matmul %16, %22, %cst {dimension_numbers = #tpu.dot_dimension_numbers<[1], [0], [0], [1], [0, 0, 1, 1], [], []>} : vector<8x64xf32>, vector<64x128xf32>, vector<8x128xf32> -> vector<8x128xf32>
    %c64 = arith.constant 64 : index
    %c0_5 = arith.constant 0 : index
    %24 = vector.load %arg2[%c64, %c0_5] : memref<200x128xf32, #tpu.memory_space<vmem>>, vector<8x128xf32>
    %cst_6 = arith.constant dense<0.000000e+00> : vector<8x128xf32>
    %25 = tpu.matmul %21, %24, %cst_6 {dimension_numbers = #tpu.dot_dimension_numbers<[1], [0], [0], [1], [0, 0, 1, 1], [], []>} : vector<8x8xf32>, vector<8x128xf32>, vector<8x128xf32> -> vector<8x128xf32>
    %26 = arith.addf %23, %25 : vector<8x128xf32>
    %27 = vector.broadcast %6 : vector<1x128xf32> to vector<8x128xf32>
    %28 = arith.addf %26, %27 : vector<8x128xf32>
    %29 = arith.negf %28 : vector<8x128xf32>
    %30 = math.exp %29 : vector<8x128xf32>
    %cst_7 = arith.constant 1.000000e+00 : f32
    %31 = vector.broadcast %cst_7 : f32 to vector<8x128xf32>
    %32 = arith.addf %31, %30 : vector<8x128xf32>
    %33 = arith.divf %31, %32 : vector<8x128xf32>
    %34 = arith.mulf %28, %33 : vector<8x128xf32>
    %c72 = arith.constant 72 : index
    %c0_8 = arith.constant 0 : index
    %35 = vector.load %arg2[%c72, %c0_8] : memref<200x128xf32, #tpu.memory_space<vmem>>, vector<128x128xf32>
    %cst_9 = arith.constant dense<0.000000e+00> : vector<8x128xf32>
    %36 = tpu.matmul %34, %35, %cst_9 {dimension_numbers = #tpu.dot_dimension_numbers<[1], [0], [0], [1], [0, 0, 1, 1], [], []>} : vector<8x128xf32>, vector<128x128xf32>, vector<8x128xf32> -> vector<8x128xf32>
    %37 = vector.broadcast %7 : vector<1x128xf32> to vector<8x128xf32>
    %38 = arith.addf %36, %37 : vector<8x128xf32>
    %c0_10 = arith.constant 0 : index
    %c0_11 = arith.constant 0 : index
    %39 = vector.load %arg4[%c0_10, %c0_11] : memref<8x128xf32, #tpu.memory_space<vmem>>, vector<8x128xf32>
    tpu.vector_store %arg4[%c0_10, %c0_11], %38 {strides = array<i32>} : memref<8x128xf32, #tpu.memory_space<vmem>>, vector<8x128xf32>,
    return
  }
  func.func @transform_0(%arg0: i32) -> (i32, i32) {
    %c0_i32 = arith.constant 0 : i32
    %c0_i32_0 = arith.constant 0 : i32
    return %arg0, %c0_i32 : i32, i32
  }
  func.func @transform_1(%arg0: i32) -> (i32, i32) {
    %c0_i32 = arith.constant 0 : i32
    %c0_i32_0 = arith.constant 0 : i32
    %c0_i32_1 = arith.constant 0 : i32
    return %c0_i32, %c0_i32_0 : i32, i32
  }
  func.func @transform_2(%arg0: i32) -> (i32, i32) {
    %c0_i32 = arith.constant 0 : i32
    %c0_i32_0 = arith.constant 0 : i32
    %c0_i32_1 = arith.constant 0 : i32
    return %c0_i32, %c0_i32_0 : i32, i32
  }
  func.func @transform_3(%arg0: i32) -> (i32, i32) {
    %c0_i32 = arith.constant 0 : i32
    %c0_i32_0 = arith.constant 0 : i32
    return %arg0, %c0_i32 : i32, i32
  }
}

</mosaic_0001>

<bundles_post_ra>
// kernel: tpu_custom_call.1
= control target key start
LH: loop header
LB: loop body
LE: loop exit
PB: predicated region body
PF: predicated region fallthrough
CT: control target
= control target key end

     0   :  { %8 = vsyncpa [#allocation3], 0  ;;  %s692_s0 = inlined_call_operand.vmem [shape: s32[8,2], index: 0, kind: input, shape index: {}]   ;;  %s693_s1 = inlined_call_operand.hbm [shape: f32[200,128], index: 1, kind: input, shape index: {}]   ;;  %s694_s2 = inlined_call_operand.vmem [shape: f32[3,128], index: 2, kind: input, shape index: {}]   ;;  %s695_s3 = inlined_call_operand.hbm [shape: f32[8,128], index: 3, kind: output, shape index: {}]  }
   0x1   :  { %9 = vsyncpa [#allocation4], 0  ;;  %s16_s14 = sshll.u32 %s693_s1, 4  ;;  %s575_s15 = smov [#allocation2]   ;;  %s17_s14 = int_to_ptr.hbm [resolvable:$true] %s16_s14 }
   0x2   :  { %s18_s16 = sshll.u32 %s575_s15, 4  ;;  %s576_s17 = smov 128   ;;  %s19_s16 = int_to_ptr.vmem [resolvable:$true] %s18_s16 }
   0x3   :  { %s577_s18 = smov 8  }
   0x4   :  { %24 = dma.hbm_to_vmem [thread:$0]  %s17_s14, 3200, %s19_s16, [#allocation3], %s576_s17, %s576_s17, %s577_s18  }
   0x5   :  { %571 = dma.done.wait [#allocation3], 3200  }
   0x6   :  { %572 = vsyncadd [#allocation3], 4294964096  ;;  %v578_v0 = vmov 0   ;;  %v31_v1 = vld [vmem:[%s692_s0] sm:$0xff]  ;;  %v579_v3 = vmov 1   ;;  %v367_v8 = vld [vmem:[#allocation2 + $0x38] sm:$0xff]  ;;  %v41_v10 = vlaneseq }
   0x7   :  { %517 = vset.pattern.permute.xlu0 %v578_v0  ;;  %v32_v2 = vcvt.s32.f32 %v31_v1  ;;  %v618_v4 = vld [vmem:[%s694_s2] sm:$0x7]  ;;  %v366_v9 = vld [vmem:[#allocation2 + $0x30] sm:$0xff]  ;;  %405 = vmatpush.msra.mxu1 %v367_v8  ;;  %v365_v12 = vld [vmem:[#allocation2 + $0x28] sm:$0xff]  ;;  %vm369_vm0 = vcmask 64512   ;;  %v580_v24 = vmov 0.0  }
   0x8   :  { %v39_v5 = vperm.slane %v618_v4, 0  ;;  %v368_v13 = vld [vmem:[#allocation2 + $0x40] sm:$0xff]  ;;  %v624_v16 = vand.u32 127, %v41_v10  ;;  %v363_v18 = vld [vmem:[#allocation2 + $0x18] sm:$0xff]  ;;  %v362_v21 = vld [vmem:[#allocation2 + $0x10] sm:$0xff]  ;;  %s587_s0 = smov [#allocation5]  }
   0x9   :  { %36 = vperm.xlu0 %517, %v32_v2   ;;  %406 = vmatpush.msra.mxu1 %v366_v9  ;;  %v364_v15 = vld [vmem:[#allocation2 + $0x20] sm:$0xff]  ;;  %v361_v23 = vld [vmem:[#allocation2 + $0x8] sm:$0xff]  ;;  %v581_v33 = vmov 683565275   ;;  %v582_v35 = vmov 2475754826  }
   0xa   :  { %388 = vmatpush.msra.mxu0 %v368_v13  ;;  %v360_v29 = vld [vmem:[#allocation2] sm:$0xff]  ;;  %v583_v38 = vmov 2131351028   ;;  %v584_v41 = vmov 2102212464   ;;  %s482_s2 = sshll.u32 %s587_s0, 4  ;;  %s483_s2 = int_to_ptr.vmem [resolvable:$true] %s482_s2 }
   0xb   :  { %407 = vmatpush.msra.mxu1 %v365_v12  ;;  %v585_v44 = vmov 920167782   ;;  %v586_v47 = vmov 1326507024   ;;  %s484_s24 = sshll.u32 %s695_s3, 4  ;;  %s485_s24 = int_to_ptr.hbm [resolvable:$true] %s484_s24 }
   0xd   :  { %408 = vmatpush.msra.mxu1 %v364_v15 }
   0xf   :  { %409 = vmatpush.msra.mxu1 %v363_v18 }
  0x11   :  { %518 = vset.pattern.permute.xlu0 %v579_v3  ;;  %410 = vmatpush.msra.mxu1 %v362_v21 }
  0x12   :  { %355 = vperm.xlu0 %518, %v31_v1  }
  0x13   :  { %411 = vmatpush.msra.mxu1 %v361_v23 }
  0x15   :  { %412 = vmatpush.msra.mxu1 %v360_v29 }
  0x7b   :  { %v37_v6 = vpop.permute.xlu0 %36 }
  0x7c   :  { %v621_v7 = vmul.f32 %v39_v5, %v37_v6 }
  0x7e   :  { %v47_v11 = vand.u32 2139095040, %v621_v7  ;;  %v44_v19 = vand.u32 2147483647, %v621_v7  ;;  %vm46_vm14 = vcmp.lt.s32.totalorder %v621_v7, 0 }
  0x80   :  { %v48_v14 = vshrl.u32 %v47_v11, 23  ;;  %v51_v26 = vand.u32 8388607, %v44_v19  ;;  %vm45_vm15 = vcmp.le.f32.partialorder %v44_v19, 0.7853982 }
  0x82   :  { %v494_v17 = vadd.s32 4294967169, %v48_v14  ;;  %v52_v31 = vor.u32 8388608, %v51_v26 }
  0x84   :  { %v54_v20 = vadd.s32 1, %v494_v17  ;;  %v356_v22 = vpop.permute.xlu0 %355  ;;  %v641_v54 = vshll.u32 %v52_v31, 8 }
  0x85   :  { %vm357_vm1 = vcmp.eq.s32.totalorder %v356_v22, %v624_v16 }
  0x86   :  { %vm55_vm2 = vcmp.gt.s32.totalorder %v54_v20, 0  ;;  %v500_v25 = vsel %vm357_vm1, 1.0, %v580_v24  ;;  %v93_v63 = vand.u32 65535, %v641_v54  ;;  %v94_v1 = vshrl.u32 %v641_v54, 16 }
  0x87   :  { %v56_v27 = vsel %vm55_vm2, %v54_v20, 0  ;;  %501 = vmatmul.msk.f32.vlgmr.msra.gmra.mxu0 %vm369_vm0, %v500_v25  ;;  %vm43_vm0 = vcmp.lt.s32.totalorder %v624_v16, 32  ;;  %v445_v16 = vld [vmem:[#allocation2 + $0x78] sm:$0xff] }
  0x88   :  { %v58_v28 = vand.u32 31, %v56_v27  ;;  %v632_v32 = vshrl.u32 %v56_v27, 5 }
  0x8a   :  { %v630_v30 = vsub.s32 32, %v58_v28  ;;  %v61_v34 = vshll.u32 %v581_v33, %v58_v28  ;;  %v64_v36 = vshll.u32 %v582_v35, %v58_v28  ;;  %v67_v40 = vshll.u32 %v583_v38, %v58_v28 }
  0x8b   :  { %v70_v43 = vshll.u32 %v584_v41, %v58_v28  ;;  %v73_v46 = vshll.u32 %v585_v44, %v58_v28  ;;  %vm76_vm3 = vcmp.lt.s32.totalorder %v632_v32, 1  ;;  %vm79_vm4 = vcmp.lt.s32.totalorder %v632_v32, 4 }
  0x8c   :  { %v62_v37 = vshrl.u32 %v582_v35, %v630_v30  ;;  %v65_v39 = vshrl.u32 %v583_v38, %v630_v30  ;;  %v68_v42 = vshrl.u32 %v584_v41, %v630_v30  ;;  %v71_v45 = vshrl.u32 %v585_v44, %v630_v30 }
  0x8d   :  { %v74_v48 = vshrl.u32 %v586_v47, %v630_v30  ;;  %vm78_vm5 = vcmp.lt.s32.totalorder %v632_v32, 3  ;;  %vm77_vm6 = vcmp.lt.s32.totalorder %v632_v32, 2  ;;  %v60_v31 = vshrl.u32 %v581_v33, %v630_v30 }
  0x8e   :  { %v63_v49 = vor.u32 %v62_v37, %v61_v34  ;;  %v66_v50 = vor.u32 %v65_v39, %v64_v36  ;;  %v69_v51 = vor.u32 %v68_v42, %v67_v40  ;;  %v72_v52 = vor.u32 %v71_v45, %v70_v43 }
  0x8f   :  { %v75_v53 = vor.u32 %v74_v48, %v73_v46 }
  0x90   :  { %v84_v55 = vsel %vm76_vm3, %v63_v49, %v66_v50  ;;  %v88_v56 = vsel %vm76_vm3, %v66_v50, %v69_v51  ;;  %v85_v57 = vsel %vm79_vm4, %v72_v52, 920167782  ;;  %v81_v27 = vsel %vm79_vm4, %v69_v51, 2102212464 }
  0x91   :  { %v89_v58 = vsel %vm79_vm4, %v75_v53, 1326507024  ;;  %v86_v59 = vsel %vm78_vm5, %v69_v51, %v85_v57  ;;  %v80_v39 = vsel %vm76_vm3, %v60_v31, %v63_v49  ;;  %v82_v40 = vsel %vm78_vm5, %v66_v50, %v81_v27 }
  0x92   :  { %v90_v60 = vsel %vm78_vm5, %v72_v52, %v89_v58  ;;  %v87_v61 = vsel %vm77_vm6, %v84_v55, %v86_v59  ;;  %v83_v30 = vsel %vm77_vm6, %v80_v39, %v82_v40 }
  0x93   :  { %v91_v62 = vsel %vm77_vm6, %v88_v56, %v90_v60  ;;  %v117_v5 = vand.u32 65535, %v87_v61  ;;  %v118_v6 = vshrl.u32 %v87_v61, 16  ;;  %v137_v47 = vmul.u32 %v641_v54, %v83_v30  ;;  %v454_v30 = vld [vmem:[#allocation2 + $0xc0] sm:$0xff] }
  0x94   :  { %v95_v2 = vand.u32 65535, %v91_v62  ;;  %v96_v3 = vshrl.u32 %v91_v62, 16  ;;  %456 = vmatpush.msra.mxu2 %v454_v30 }
  0x95   :  { %v120_v10 = vmul.u32 %v118_v6, %v93_v63  ;;  %v121_v11 = vmul.u32 %v117_v5, %v94_v1  ;;  %v119_v15 = vmul.u32 %v117_v5, %v93_v63  ;;  %v122_v21 = vmul.u32 %v118_v6, %v94_v1 }
  0x96   :  { %v98_v8 = vmul.u32 %v96_v3, %v93_v63  ;;  %v99_v9 = vmul.u32 %v95_v2, %v94_v1  ;;  %v97_v12 = vmul.u32 %v95_v2, %v93_v63  ;;  %v100_v14 = vmul.u32 %v96_v3, %v94_v1 }
  0x97   :  { %v123_v17 = vshll.u32 %v120_v10, 16  ;;  %v125_v23 = vshll.u32 %v121_v11, 16  ;;  %v124_v37 = vshrl.u32 %v120_v10, 16  ;;  %v126_v43 = vshrl.u32 %v121_v11, 16 }
  0x98   :  { %v101_v13 = vshll.u32 %v98_v8, 16  ;;  %v103_v18 = vshll.u32 %v99_v9, 16  ;;  %v102_v34 = vshrl.u32 %v98_v8, 16  ;;  %v104_v41 = vshrl.u32 %v99_v9, 16 }
  0x99   :  { %vm127_vm8 = vc.u32 %v119_v15, %v123_v17  ;;  %v129_v24 = vadd.s32 %v123_v17, %v119_v15 }
  0x9a   :  { %vm105_vm7 = vc.u32 %v97_v12, %v101_v13  ;;  %v107_v20 = vadd.s32 %v101_v13, %v97_v12  ;;  %v128_v26 = vsel %vm127_vm8, 1, %v578_v0  ;;  %vm393_vm8 = vcmask 523264  }
  0x9b   :  { %v106_v22 = vsel %vm105_vm7, 1, %v578_v0  ;;  %v130_v29 = vadd.s32 %v128_v26, %v122_v21  ;;  %vm131_vm10 = vc.u32 %v129_v24, %v125_v23  ;;  %v133_v46 = vadd.s32 %v129_v24, %v125_v23 }
  0x9c   :  { %v108_v25 = vadd.s32 %v106_v22, %v100_v14  ;;  %vm109_vm9 = vc.u32 %v107_v20, %v103_v18  ;;  %v132_v36 = vsel %vm131_vm10, 1, %v578_v0  ;;  %vm187_vm7 = vweird.f32 %v621_v7 }
  0x9d   :  { %v110_v28 = vsel %vm109_vm9, 1, %v578_v0  ;;  %v134_v38 = vadd.s32 %v132_v36, %v130_v29 }
  0x9e   :  { %v112_v35 = vadd.s32 %v110_v28, %v108_v25 }
  0x9f   :  { %v135_v44 = vadd.s32 %v134_v38, %v124_v37 }
  0xa0   :  { %v113_v42 = vadd.s32 %v112_v35, %v102_v34 }
  0xa1   :  { %v136_v33 = vadd.s32 %v135_v44, %v126_v43 }
  0xa2   :  { %v114_v45 = vadd.s32 %v113_v42, %v104_v41 }
  0xa3   :  { %v140_v0 = vadd.s32 1, %v136_v33 }
  0xa4   :  { %vm139_vm11 = vc.u32 %v114_v45, %v133_v46  ;;  %v138_v32 = vadd.s32 %v133_v46, %v114_v45 }
  0xa5   :  { %v141_v48 = vsel %vm139_vm11, %v140_v0, %v136_v33  ;;  %v453_v33 = vld [vmem:[#allocation2 + $0xb8] sm:$0xff]  ;;  %v452_v0 = vld [vmem:[#allocation2 + $0xb0] sm:$0xff] }
  0xa6   :  { %v142_v51 = vadd.s32 %v141_v48, %v137_v47  ;;  %457 = vmatpush.msra.mxu2 %v453_v33  ;;  %v451_v47 = vld [vmem:[#allocation2 + $0xa8] sm:$0xff]  ;;  %v450_v48 = vld [vmem:[#allocation2 + $0xa0] sm:$0xff] }
  0xa8   :  { %v143_v49 = vadd.s32 536870912, %v142_v51  ;;  %458 = vmatpush.msra.mxu2 %v452_v0 }
  0xaa   :  { %v144_v52 = vshrl.u32 %v143_v49, 30  ;;  %459 = vmatpush.msra.mxu2 %v451_v47  ;;  %v447_v49 = vld [vmem:[#allocation2 + $0x88] sm:$0xff] }
  0xac   :  { %v145_v53 = vshll.u32 %v144_v52, 30  ;;  %v168_v11 = vsub.s32 4, %v144_v52  ;;  %460 = vmatpush.msra.mxu2 %v450_v48 }
  0xae   :  { %v146_v50 = vsub.s32 %v142_v51, %v145_v53  ;;  %v169_v17 = vsel %vm46_vm14, %v168_v11, %v144_v52  ;;  %v448_v51 = vld [vmem:[#allocation2 + $0x90] sm:$0xff]  ;;  %v446_v52 = vld [vmem:[#allocation2 + $0x80] sm:$0xff] }
  0xaf   :  { %v171_v21 = vsel %vm45_vm15, 0, %v169_v17  ;;  %v444_v53 = vld [vmem:[#allocation2 + $0x70] sm:$0xff] }
  0xb0   :  { %vm147_vm12 = vcmp.lt.s32.totalorder %v146_v50, 0  ;;  %v148_v55 = vsub.s32 0, %v146_v50  ;;  %v188_v26 = vadd.s32 3, %v171_v21  ;;  %v343_v31 = vand.u32 3, %v171_v21 }
  0xb2   :  { %v149_v56 = vsel %vm147_vm12, %v148_v55, %v146_v50  ;;  %v189_v34 = vand.u32 3, %v188_v26  ;;  %vm344_vm1 = vcmp.lt.s32.totalorder %v343_v31, 2  ;;  %vm345_vm2 = vcmp.eq.s32.totalorder %v343_v31, 0  ;;  %v442_v55 = vld [vmem:[#allocation2 + $0x60] sm:$0xff] }
  0xb3   :  { %v150_v57 = vclz %v149_v56  ;;  %vm348_vm6 = vcmp.eq.s32.totalorder %v343_v31, 2  ;;  %v441_v56 = vld [vmem:[#allocation2 + $0x58] sm:$0xff] }
  0xb4   :  { %vm190_vm3 = vcmp.lt.s32.totalorder %v189_v34, 2  ;;  %vm191_vm4 = vcmp.eq.s32.totalorder %v189_v34, 0  ;;  %vm194_vm5 = vcmp.eq.s32.totalorder %v189_v34, 2 }
  0xb5   :  { %v495_v58 = vadd.s32 4294967294, %v150_v57 }
  0xb7   :  { %vm496_vm13 = vcmp.lt.s32.totalorder %v495_v58, 0 }
  0xb8   :  { %v153_v59 = vsel %vm496_vm13, 0, %v495_v58  ;;  %v440_v58 = vld [vmem:[#allocation2 + $0x50] sm:$0xff] }
  0xb9   :  { %v154_v60 = vsub.s32 32, %v153_v59  ;;  %v158_v61 = vsub.s32 4294967266, %v153_v59  ;;  %v155_v62 = vshll.u32 %v146_v50, %v153_v59  ;;  %v443_v50 = vld [vmem:[#allocation2 + $0x68] sm:$0xff]  ;;  %v417_v59 = vperm.slane %v618_v4, 1 }
  0xbb   :  { %v156_v63 = vshrl.u32 %v138_v32, %v154_v60  ;;  %v159_v1 = vadd.s32 127, %v158_v61  ;;  %v439_v60 = vld [vmem:[#allocation2 + $0x48] sm:$0xff] }
  0xbd   :  { %v157_v54 = vor.u32 %v156_v63, %v155_v62  ;;  %v160_v2 = vshll.u32 %v159_v1, 23 }
  0xbf   :  { %v161_v3 = vor.u32 4788187, %v160_v2  ;;  %v164_v6 = vcvt.s32.f32 %v157_v54 }
  0xc1   :  { %v162_v5 = vand.u32 2147483647, %v161_v3 }
  0xc3   :  { %v165_v8 = vmul.f32 %v164_v6, %v162_v5 }
  0xc5   :  { %v166_v9 = vxor.u32 2147483648, %v165_v8 }
  0xc7   :  { %v167_v10 = vsel %vm46_vm14, %v166_v9, %v165_v8 }
  0xc8   :  { %v170_v12 = vsel %vm45_vm15, %v621_v7, %v167_v10  ;;  %v449_v7 = vld [vmem:[#allocation2 + $0x98] sm:$0xff] }
  0xc9   :  { %v172_v13 = vmul.f32 %v170_v12, %v170_v12  ;;  %461 = vmatpush.msra.mxu2 %v449_v7 }
  0xcb   :  { %v173_v14 = vmul.f32 -0.001358992, %v172_v13  ;;  %v180_v15 = vmul.f32 -0.00019511016, %v172_v13  ;;  %462 = vmatpush.msra.mxu2 %v448_v51 }
  0xcd   :  { %v174_v18 = vadd.f32 0.041655596, %v173_v14  ;;  %v181_v20 = vadd.f32 0.008332121, %v180_v15  ;;  %463 = vmatpush.msra.mxu2 %v447_v49  ;;  %v455_v15 = vperm.slane %v618_v4, 2 }
  0xcf   :  { %v175_v22 = vmul.f32 %v174_v18, %v172_v13  ;;  %v182_v23 = vmul.f32 %v181_v20, %v172_v13  ;;  %464 = vmatpush.msra.mxu2 %v446_v52 }
  0xd1   :  { %v176_v24 = vadd.f32 -0.4999988, %v175_v22  ;;  %v183_v25 = vadd.f32 -0.16666654, %v182_v23  ;;  %465 = vmatpush.msra.mxu2 %v445_v16 }
  0xd3   :  { %v177_v27 = vmul.f32 %v176_v24, %v172_v13  ;;  %v184_v28 = vmul.f32 %v183_v25, %v172_v13  ;;  %466 = vmatpush.msra.mxu2 %v444_v53 }
  0xd5   :  { %v178_v29 = vadd.f32 1.0, %v177_v27  ;;  %v185_v19 = vadd.f32 1.0, %v184_v28  ;;  %467 = vmatpush.msra.mxu2 %v443_v50 }
  0xd7   :  { %v186_v35 = vmul.f32 %v185_v19, %v170_v12  ;;  %v195_v36 = vxor.u32 2147483648, %v178_v29  ;;  %468 = vmatpush.msra.mxu2 %v442_v55 }
  0xd9   :  { %v192_v37 = vxor.u32 2147483648, %v186_v35  ;;  %v196_v39 = vsel %vm194_vm5, %v195_v36, %v186_v35  ;;  %v350_v41 = vsel %vm348_vm6, %v195_v36, %v186_v35  ;;  %469 = vmatpush.msra.mxu2 %v441_v56 }
  0xdb   :  { %v193_v38 = vsel %vm191_vm4, %v178_v29, %v192_v37  ;;  %v347_v40 = vsel %vm345_vm2, %v178_v29, %v192_v37  ;;  %470 = vmatpush.msra.mxu2 %v440_v58 }
  0xdc   :  { %v197_v42 = vsel %vm190_vm3, %v193_v38, %v196_v39  ;;  %v351_v43 = vsel %vm344_vm1, %v347_v40, %v350_v41 }
  0xdd   :  { %v198_v44 = vsel %vm187_vm7, nan, %v197_v42  ;;  %v352_v45 = vsel %vm187_vm7, nan, %v351_v43  ;;  %471 = vmatpush.msra.mxu2 %v439_v60 }
  0xde   :  { %v353_v46 = vsel %vm43_vm0, %v198_v44, %v352_v45 }
  0xdf   :  { %502 = vmatmul.msk.f32.vlgmr.msra.gmra.mxu1 %vm393_vm8, %v353_v46 }
 0x104   :  { %v390_v57 = vpop.f32.mrf.mxu0 }
 0x15c   :  { %v414_v32 = vpop.f32.mrf.mxu1 }
 0x15d   :  { %v415_v61 = vadd.f32 %v414_v32, %v390_v57 }
 0x15f   :  { %v418_v62 = vadd.f32 %v417_v59, %v415_v61 }
 0x161   :  { %v503_v63 = vmul.f32 -1.442695, %v418_v62 }
 0x163   :  { %519 = vpow2.f32 %v503_v63 }
 0x169   :  { %v520_v1 = vpop.eup %519 }
 0x16a   :  { %v422_v54 = vadd.f32 1.0, %v520_v1 }
 0x16c   :  { %521 = vrcp.f32 %v422_v54  ;;  %v434_v6 = vand.u32 2147483648, %v422_v54  ;;  %v432_v9 = vand.u32 2147483647, %v422_v54  ;;  %vm428_vm10 = vweird.f32 %v422_v54 }
 0x16e   :  { %v435_v11 = vor.u32 1.1754944e-38, %v434_v6  ;;  %vm433_vm12 = vcmp.eq.f32.partialorder %v432_v9, 8.507059e+37 }
 0x172   :  { %v522_v2 = vpop.eup %521 }
 0x173   :  { %v424_v3 = vmul.f32 %v522_v2, %v422_v54  ;;  %vm429_vm9 = vweird.f32 %v522_v2 }
 0x174   :  { %vm430_vm11 = vmor %vm428_vm10, %vm429_vm9 }
 0x175   :  { %v425_v5 = vsub.f32 1.0, %v424_v3 }
 0x177   :  { %v426_v8 = vmul.f32 %v522_v2, %v425_v5 }
 0x179   :  { %v427_v10 = vadd.f32 %v522_v2, %v426_v8 }
 0x17b   :  { %v431_v12 = vsel %vm430_vm11, %v522_v2, %v427_v10 }
 0x17c   :  { %v436_v13 = vsel %vm433_vm12, %v435_v11, %v431_v12 }
 0x17d   :  { %v438_v14 = vmul.f32 %v436_v13, %v418_v62 }
 0x17f   :  { %472 = vmatmul.f32.vlgmr.msra.gmra.mxu2 %v438_v14 }
 0x202   :  { %v473_v17 = vpop.f32.mrf.mxu2 }
 0x203   :  { %v474_v18 = vadd.f32 %v473_v17, %v455_v15 }
 0x205   :  { %476 = vst [vmem:[#allocation5] sm:$0xff] %v474_v18 }
 0x206   :  { %487 = dma.vmem_to_hbm [thread:$0]  %s483_s2, 128, %s485_s24, [#allocation4]  }
 0x207   :  { %573 = dma.done.wait [#allocation4], 128  }
 0x208   :  { %574 = vsyncadd [#allocation4], 4294967168 }
 0x209   :  { %492 = vsyncpa [#allocation3], 1 }
 0x20a   :  { %493 = vsyncpa [#allocation4], 1 }

</bundles_post_ra>
